<compile_context>
chip_gen: v7x
topology: tpu7x:2x2x1
jax: 0.10.0
libtpu: 0.0.40
codegen_flags: <defaults>
</compile_context>

<pallas_src>
import functools

import jax
import jax.numpy as jnp
from jax.experimental import pallas as pl
from jax.experimental.pallas import tpu as pltpu

N_BINS = 15


def _ece_kernel(logits_ref, labels_ref, ece_ref, sdiff_ref, *,
                n_total, n_bins, mask_tail):
    i = pl.program_id(0)

    @pl.when(i == 0)
    def _():
        sdiff_ref[...] = jnp.zeros_like(sdiff_ref)

    logits = logits_ref[...].astype(jnp.float32)     # (C, T): samples on lanes
    labels = labels_ref[...]                         # (1, T) int32
    c, t = logits.shape

    # Softmax confidence without materializing probs:
    #   conf = max_j softmax(x)_j = exp(0) / sum_j exp(x_j - max) = 1 / denom
    m = jnp.max(logits, axis=0, keepdims=True)                    # (1, T)
    denom = jnp.sum(jnp.exp(logits - m), axis=0, keepdims=True)   # (1, T)
    conf = pl.reciprocal(denom, approx=False)                     # (1, T)

    # prediction = first argmax over classes (== argmax of softmax, matches
    # torch.max tie-breaking)
    row = jax.lax.broadcasted_iota(jnp.int32, logits.shape, 0)    # (C, T)
    pred = jnp.min(jnp.where(logits == m, row, c), axis=0, keepdims=True)
    acc = (pred == labels).astype(jnp.float32)                    # (1, T)

    # Per-sample signed calibration gap.  The per-bin count cancels in the ECE
    # formula, so this is the only quantity that needs to be bin-accumulated.
    d = conf - acc                                                # (1, T)

    # Arithmetic binning: bin k covers (k/n_bins, (k+1)/n_bins].
    bin_idx = jnp.clip(jnp.ceil(conf * n_bins).astype(jnp.int32) - 1,
                       0, n_bins - 1)                             # (1, T)

    if mask_tail:
        # Lanes past the true batch size (partial last tile) match no bin.
        col = jax.lax.broadcasted_iota(jnp.int32, (1, t), 1)
        valid = (i * t + col) < n_total
        bin_idx = jnp.where(valid, bin_idx, n_bins)

    bins = jax.lax.broadcasted_iota(jnp.int32, (n_bins, t), 0)    # (B, T)
    contrib = jnp.where(bin_idx == bins, d, 0.0)                  # (B, T) select
    sdiff_ref[...] += jnp.sum(contrib, axis=1, keepdims=True)     # (B, 1)

    @pl.when(i == pl.num_programs(0) - 1)
    def _():
        ece_ref[0] = (jnp.sum(jnp.abs(sdiff_ref[...]))
                      * jnp.float32(1.0 / n_total))


def ece_loss(logits, labels, n_bins=N_BINS, vmem_block_bytes=2 * 1024 * 1024):
    """Returns a shape-(1,) float32 array, matching torch's output shape."""
    n, c = logits.shape
    # Lane-dense layout: samples on the 128-lane axis; keep native dtype
    # through the DMA (kernel casts to f32 internally).
    logits_t = logits.T                                   # (C, N)
    labels2d = labels.astype(jnp.int32).reshape(1, n)

    # Samples per tile: amortize per-grid-step overhead while keeping the
    # (C + n_bins, tile) f32 working set well under the scoped-VMEM budget.
    # TODO(synk): for very large class counts (e.g. LM vocab) split the class
    # axis across grid steps / shard N across the two v7x TensorCores.
    cols = max(1, vmem_block_bytes // (4 * (c + n_bins)))
    tile_cap = min(8192, max(128, (cols // 128) * 128))
    tile = n if n <= tile_cap else tile_cap               # full dim or mult. of 128
    grid = (pl.cdiv(n, tile),)
    mask_tail = (n % tile) != 0

    kernel = functools.partial(_ece_kernel, n_total=n, n_bins=n_bins,
                               mask_tail=mask_tail)

    return pl.pallas_call(
        kernel,
        out_shape=jax.ShapeDtypeStruct((1,), jnp.float32),
        grid_spec=pltpu.PrefetchScalarGridSpec(
            num_scalar_prefetch=0,
            grid=grid,
            in_specs=[
                pl.BlockSpec((c, tile), lambda i: (0, i)),   # logits.T tile
                pl.BlockSpec((1, tile), lambda i: (0, i)),   # labels tile
            ],
            out_specs=pl.BlockSpec(memory_space=pltpu.MemorySpace.SMEM),
            scratch_shapes=[
                pltpu.VMEM((n_bins, 1), jnp.float32),   # per-bin sum(conf - acc)
            ],
        ),
        compiler_params=pltpu.CompilerParams(
            dimension_semantics=("arbitrary",),   # reduction over N
        ),
    )(logits_t, labels2d)


def _ece_ref(logits, labels, n_bins=N_BINS):
    """Pure-JAX reference mirroring the PyTorch loop."""
    probs = jax.nn.softmax(logits.astype(jnp.float32), axis=1)
    conf = jnp.max(probs, axis=1)
    pred = jnp.argmax(probs, axis=1)
    acc = (pred == labels).astype(jnp.float32)
    bounds = jnp.linspace(0.0, 1.0, n_bins + 1, dtype=jnp.float32)
    ece = jnp.zeros((1,), jnp.float32)
    for lo, up in zip(bounds[:-1], bounds[1:]):
        in_bin = (conf > lo) & (conf <= up)
        cnt = jnp.sum(in_bin.astype(jnp.float32))
        prop = cnt / conf.shape[0]
        safe = jnp.where(cnt > 0, cnt, 1.0)
        acc_b = jnp.sum(jnp.where(in_bin, acc, 0.0)) / safe
        conf_b = jnp.sum(jnp.where(in_bin, conf, 0.0)) / safe
        ece = ece + jnp.where(cnt > 0, jnp.abs(conf_b - acc_b) * prop, 0.0)
    return ece


if __name__ == "__main__":
    key = jax.random.PRNGKey(0)
    k_logits, k_labels = jax.random.split(key)

    N, C = 64, 10  # small classification batch: logits [N, C], labels [N]
    logits = jax.random.normal(k_logits, (N, C), dtype=jnp.float32) * 3.0
    labels = jax.random.randint(k_labels, (N,), 0, C, dtype=jnp.int32)

    out = jax.block_until_ready(ece_loss(logits, labels))
    ref = jax.block_until_ready(_ece_ref(logits, labels))

    assert out.shape == (1,)
    assert jnp.allclose(out, ref, atol=1e-5), (out, ref)

    print("KERNEL_OK")
</pallas_src>

<mosaic_0001>
module attributes {stable_mosaic.version = 11 : i64} {
  func.func @_ece_kernel(%arg0: i32, %arg1: memref<10x64xf32, #tpu.memory_space<vmem>>, %arg2: memref<1x64xi32, #tpu.memory_space<vmem>>, %arg3: memref<1xf32, #tpu.memory_space<smem>>, %arg4: memref<15x1xf32, #tpu.memory_space<vmem>>) attributes {dimension_semantics = [#tpu.dimension_semantics<arbitrary>], iteration_bounds = array<i64: 1>, scalar_prefetch = 0 : i64, scratch_operands = 1 : i64, tpu.core_type = #tpu.core_type<tc>, window_params = [{transform_indices = @transform_0, window_bounds = array<i64: 10, 64>}, {transform_indices = @transform_1, window_bounds = array<i64: 1, 64>}, {transform_indices = @transform_2, window_bounds = array<i64: 1>}]} {
    %c0_i32 = arith.constant 0 : i32
    %0 = arith.cmpi eq, %arg0, %c0_i32 : i32
    %1 = arith.extui %0 : i1 to i32
    %c0_i32_0 = arith.constant 0 : i32
    %2 = arith.cmpi ne, %1, %c0_i32_0 : i32
    scf.if %2 {
      %cst_16 = arith.constant 0.000000e+00 : f32
      %49 = vector.broadcast %cst_16 : f32 to vector<15x1xf32>
      %c0_17 = arith.constant 0 : index
      %c0_18 = arith.constant 0 : index
      %50 = vector.load %arg4[%c0_17, %c0_18] : memref<15x1xf32, #tpu.memory_space<vmem>>, vector<15x1xf32>
      tpu.vector_store %arg4[%c0_17, %c0_18], %49 {strides = array<i32>} : memref<15x1xf32, #tpu.memory_space<vmem>>, vector<15x1xf32>,
    } else {
    }
    %c0 = arith.constant 0 : index
    %c0_1 = arith.constant 0 : index
    %3 = vector.load %arg1[%c0, %c0_1] : memref<10x64xf32, #tpu.memory_space<vmem>>, vector<10x64xf32>
    %c0_2 = arith.constant 0 : index
    %c0_3 = arith.constant 0 : index
    %4 = vector.load %arg2[%c0_2, %c0_3] : memref<1x64xi32, #tpu.memory_space<vmem>>, vector<1x64xi32>
    %cst = arith.constant dense<0xFF800000> : vector<64xf32>
    %5 = vector.multi_reduction <maximumf>, %3, %cst [0] : vector<10x64xf32> to vector<64xf32>
    %6 = vector.shape_cast %5 : vector<64xf32> to vector<1x64xf32>
    %7 = vector.broadcast %6 : vector<1x64xf32> to vector<10x64xf32>
    %8 = arith.subf %3, %7 : vector<10x64xf32>
    %9 = math.exp %8 : vector<10x64xf32>
    %cst_4 = arith.constant dense<0.000000e+00> : vector<64xf32>
    %10 = vector.multi_reduction <add>, %9, %cst_4 [0] : vector<10x64xf32> to vector<64xf32>
    %11 = vector.shape_cast %10 : vector<64xf32> to vector<1x64xf32>
    %12 = tpu.reciprocal %11 : vector<1x64xf32> -> vector<1x64xf32>
    %13 = tpu.iota {dimensions = array<i32: 0>} : vector<10x64xi32>
    %14 = vector.broadcast %6 : vector<1x64xf32> to vector<10x64xf32>
    %15 = arith.cmpf oeq, %3, %14 : vector<10x64xf32>
    %c10_i32 = arith.constant 10 : i32
    %16 = vector.broadcast %c10_i32 : i32 to vector<10x64xi32>
    %17 = arith.select %15, %13, %16 : vector<10x64xi1>, vector<10x64xi32>
    %cst_5 = arith.constant dense<2147483647> : vector<64xi32>
    %18 = vector.multi_reduction <minsi>, %17, %cst_5 [0] : vector<10x64xi32> to vector<64xi32>
    %19 = vector.shape_cast %18 : vector<64xi32> to vector<1x64xi32>
    %20 = arith.cmpi eq, %19, %4 : vector<1x64xi32>
    %21 = arith.extui %20 : vector<1x64xi1> to vector<1x64xi32>
    %22 = arith.sitofp %21 : vector<1x64xi32> to vector<1x64xf32>
    %23 = arith.subf %12, %22 : vector<1x64xf32>
    %cst_6 = arith.constant 1.500000e+01 : f32
    %24 = vector.broadcast %cst_6 : f32 to vector<1x64xf32>
    %25 = arith.mulf %12, %24 : vector<1x64xf32>
    %26 = math.ceil %25 : vector<1x64xf32>
    %27 = arith.fptosi %26 : vector<1x64xf32> to vector<1x64xi32>
    %c1_i32 = arith.constant 1 : i32
    %28 = vector.broadcast %c1_i32 : i32 to vector<1x64xi32>
    %29 = arith.subi %27, %28 : vector<1x64xi32>
    %c0_i32_7 = arith.constant 0 : i32
    %c14_i32 = arith.constant 14 : i32
    %30 = vector.broadcast %c0_i32_7 : i32 to vector<1x64xi32>
    %31 = arith.maxsi %30, %29 : vector<1x64xi32>
    %32 = vector.broadcast %c14_i32 : i32 to vector<1x64xi32>
    %33 = arith.minsi %32, %31 : vector<1x64xi32>
    %34 = tpu.iota {dimensions = array<i32: 0>} : vector<15x64xi32>
    %35 = vector.broadcast %33 : vector<1x64xi32> to vector<15x64xi32>
    %36 = arith.cmpi eq, %35, %34 : vector<15x64xi32>
    %cst_8 = arith.constant 0.000000e+00 : f32
    %37 = vector.shape_cast %23 : vector<1x64xf32> to vector<1x64xf32>
    %38 = vector.broadcast %37 : vector<1x64xf32> to vector<15x64xf32>
    %39 = vector.broadcast %cst_8 : f32 to vector<15x64xf32>
    %40 = arith.select %36, %38, %39 : vector<15x64xi1>, vector<15x64xf32>
    %c0_9 = arith.constant 0 : index
    %c0_10 = arith.constant 0 : index
    %41 = vector.load %arg4[%c0_9, %c0_10] : memref<15x1xf32, #tpu.memory_space<vmem>>, vector<15x1xf32>
    %cst_11 = arith.constant dense<0.000000e+00> : vector<15xf32>
    %42 = vector.multi_reduction <add>, %40, %cst_11 [1] : vector<15x64xf32> to vector<15xf32>
    %43 = vector.shape_cast %42 : vector<15xf32> to vector<15x1xf32>
    %44 = arith.addf %41, %43 : vector<15x1xf32>
    %c0_12 = arith.constant 0 : index
    %c0_13 = arith.constant 0 : index
    %45 = vector.load %arg4[%c0_12, %c0_13] : memref<15x1xf32, #tpu.memory_space<vmem>>, vector<15x1xf32>
    tpu.vector_store %arg4[%c0_12, %c0_13], %44 {strides = array<i32>} : memref<15x1xf32, #tpu.memory_space<vmem>>, vector<15x1xf32>,
    %c0_i32_14 = arith.constant 0 : i32
    %46 = arith.cmpi eq, %arg0, %c0_i32_14 : i32
    %47 = arith.extui %46 : i1 to i32
    %c0_i32_15 = arith.constant 0 : i32
    %48 = arith.cmpi ne, %47, %c0_i32_15 : i32
    scf.if %48 {
      %c0_16 = arith.constant 0 : index
      %c0_17 = arith.constant 0 : index
      %49 = vector.load %arg4[%c0_16, %c0_17] : memref<15x1xf32, #tpu.memory_space<vmem>>, vector<15x1xf32>
      %50 = math.absf %49 : vector<15x1xf32>
      %51 = vector.shape_cast %50 : vector<15x1xf32> to vector<1x15x1xf32>
      %cst_18 = arith.constant dense<0.000000e+00> : vector<1xf32>
      %52 = vector.multi_reduction <add>, %51, %cst_18 [1, 2] : vector<1x15x1xf32> to vector<1xf32>
      %53 = vector.shape_cast %52 : vector<1xf32> to vector<1x1x1xf32>
      %54 = vector.extract %53[0, 0, 0] : f32 from vector<1x1x1xf32>
      %cst_19 = arith.constant 1.562500e-02 : f32
      %55 = arith.mulf %54, %cst_19 : f32
      %c0_20 = arith.constant 0 : index
      %56 = memref.load %arg3[%c0_20] : memref<1xf32, #tpu.memory_space<smem>>
      memref.store %55, %arg3[%c0_20] : memref<1xf32, #tpu.memory_space<smem>>
    } else {
    }
    return
  }
  func.func @transform_0(%arg0: i32) -> (i32, i32) {
    %c0_i32 = arith.constant 0 : i32
    %c0_i32_0 = arith.constant 0 : i32
    return %c0_i32, %arg0 : i32, i32
  }
  func.func @transform_1(%arg0: i32) -> (i32, i32) {
    %c0_i32 = arith.constant 0 : i32
    %c0_i32_0 = arith.constant 0 : i32
    return %c0_i32, %arg0 : i32, i32
  }
  func.func @transform_2(%arg0: i32) -> i32 {
    %c0_i32 = arith.constant 0 : i32
    %c0_i32_0 = arith.constant 0 : i32
    return %c0_i32 : i32
  }
}

</mosaic_0001>

<bundles_post_ra>
// kernel: tpu_custom_call.1
= control target key start
LH: loop header
LB: loop body
LE: loop exit
PB: predicated region body
PF: predicated region fallthrough
CT: control target
= control target key end

     0   :  { %7 = vsyncpa [#allocation4], 0  ;;  %s268_s0 = inlined_call_operand.hbm [shape: f32[10,64], index: 0, kind: input, shape index: {}]   ;;  %s269_s1 = inlined_call_operand.vmem [shape: s32[1,64], index: 1, kind: input, shape index: {}]   ;;  %s270_s2 = inlined_call_operand.hbm [shape: f32[1], index: 2, kind: output, shape index: {}]  }
   0x1   :  { %8 = vsyncpa [#allocation5], 0  ;;  %s208_s9 = smov [#allocation3]   ;;  %s172_s13 = scalar_lea.hbm %s268_s0, 256 }
   0x2   :  { %s14_s10 = sshll.u32 %s208_s9, 4  ;;  %p173_p0 = scmp.ne.s32.totalorder %s268_s0, %s172_s13  ;;  %s15_s10 = int_to_ptr.vmem [resolvable:$true] %s14_s10 }
   0x3   :  { %p176_p1 = scmp.lt.u32.totalorder %s172_s13, %s268_s0 }
   0x5   :  { %p178_p2 = pnand %p176_p1, %p173_p0 }
   0x7   :  { %181 = shalt.err (!%p178_p2)
}
   0x8   :  { %s182_s18 = scalar_lea.vmem %s15_s10, 256  ;;  %p187_p4 = scmp.lt.s32.totalorder %s15_s10, %s15_s10 }
   0x9   :  { %p183_p3 = scmp.ne.s32.totalorder %s15_s10, %s182_s18  ;;  %p188_p5 = scmp.lt.s32.totalorder %s182_s18, %s182_s18 }
   0xb   :  { %p189_p6 = por %p188_p5, %p187_p4 }
   0xd   :  { %p190_p7 = pnand %p189_p6, %p183_p3 }
   0xf   :  { %193 = shalt.err (!%p190_p7)
}
  0x10   :  { %s209_s19 = smov 128   ;;  %s210_s20 = smov 8  }
  0x11   :  { %20 = dma.hbm_to_vmem [thread:$0]  %s268_s0, 256, %s15_s10, [#allocation4], %s209_s19, %s209_s19, %s210_s20  }
  0x12   :  { %204 = dma.done.wait [#allocation4], 256  }
  0x13   :  { %205 = vsyncadd [#allocation4], 4294967040  ;;  %vm30_vm0 = vcmask 7168   ;;  %v211_v0 = vmov 0.0   ;;  %vm37_vm1 = vcmask 523264   ;;  %vm39_vm2 = vcmask 517120  }
  0x14   :  { %31 = vst.msk [vmem:[#allocation2] sm:$0xff] %vm30_vm0, %v211_v0  ;;  %v34_v1 = vld [vmem:[#allocation3] sm:$0xff]  ;;  %v35_v2 = vld [vmem:[#allocation3 + $0x8] sm:$0x3]  ;;  %v64_v7 = vlaneseq  ;;  %v36_v40 = vld [vmem:[%s269_s1] sm:$0x1] }
  0x15   :  { %v38_v3 = vsel %vm37_vm1, %v34_v1, -inf  ;;  %v40_v4 = vsel %vm39_vm2, %v35_v2, -inf  ;;  %vm109_vm14 = vcmask 522240   ;;  %vm32_vm15 = vcmask 6144   ;;  %s194_s27 = scalar_lea.hbm %s270_s2, 16 }
  0x16   :  { %v41_v5 = vmax.f32 %v38_v3, %v40_v4  ;;  %v65_v10 = vshrl.u32 %v64_v7, 7  ;;  %33 = vst.msk [vmem:[#allocation2 + $0x8] sm:$0x7f] %vm32_vm15, %v211_v0  ;;  %p195_p8 = scmp.ne.s32.totalorder %s270_s2, %s194_s27  ;;  %p198_p9 = scmp.lt.u32.totalorder %s194_s27, %s270_s2 }
  0x18   :  { %v42_v6 = vrot.slane %v41_v5, 4  ;;  %v66_v13 = vadd.s32 8, %v65_v10  ;;  %v100_v49 = vsub.s32 0, %v65_v10  ;;  %p200_p10 = pnand %p198_p9, %p195_p8 }
  0x1a   :  { %v43_v8 = vmax.f32 %v41_v5, %v42_v6 }
  0x1b   :  { %v104_v58 = vld [vmem:[#allocation2] sm:$0xff] }
  0x1c   :  { %v44_v9 = vrot.slane %v43_v8, 2 }
  0x1d   :  { %v105_v61 = vld [vmem:[#allocation2 + $0x8] sm:$0x7f] }
  0x1e   :  { %v45_v11 = vmax.f32 %v43_v8, %v44_v9 }
  0x20   :  { %v46_v12 = vrot.slane %v45_v11, 1 }
  0x22   :  { %v47_v14 = vmax.f32 %v45_v11, %v46_v12 }
  0x24   :  { %v48_v15 = vsub.f32 %v34_v1, %v47_v14  ;;  %v49_v16 = vsub.f32 %v35_v2, %v47_v14  ;;  %vm67_vm3 = vcmp.eq.f32.partialorder %v34_v1, %v47_v14  ;;  %vm68_vm4 = vcmp.eq.f32.partialorder %v35_v2, %v47_v14 }
  0x25   :  { %v69_v17 = vsel %vm67_vm3, %v65_v10, 10  ;;  %v70_v18 = vsel %vm68_vm4, %v66_v13, 10 }
  0x26   :  { %v50_v19 = vmul.f32 1.442695, %v48_v15  ;;  %v52_v20 = vmul.f32 1.442695, %v49_v16  ;;  %v71_v21 = vsel %vm37_vm1, %v69_v17, 2147483647 }
  0x27   :  { %v72_v22 = vsel %vm39_vm2, %v70_v18, 2147483647 }
  0x28   :  { %166 = vpow2.f32 %v50_v19  ;;  %vm73_vm5 = vcmp.lt.s32.totalorder %v71_v21, %v72_v22 }
  0x29   :  { %168 = vpow2.f32 %v52_v20  ;;  %v74_v23 = vsel %vm73_vm5, %v71_v21, %v72_v22 }
  0x2a   :  { %v75_v24 = vrot.slane %v74_v23, 4 }
  0x2c   :  { %vm76_vm6 = vcmp.lt.s32.totalorder %v74_v23, %v75_v24 }
  0x2d   :  { %v77_v31 = vsel %vm76_vm6, %v74_v23, %v75_v24 }
  0x2e   :  { %v78_v34 = vrot.slane %v77_v31, 2 }
  0x30   :  { %vm79_vm7 = vcmp.lt.s32.totalorder %v77_v31, %v78_v34 }
  0x31   :  { %v80_v38 = vsel %vm79_vm7, %v77_v31, %v78_v34 }
  0x32   :  { %v167_v25 = vpop.eup %166  ;;  %v81_v39 = vrot.slane %v80_v38, 1 }
  0x33   :  { %v169_v26 = vpop.eup %168  ;;  %v54_v27 = vsel %vm37_vm1, %v167_v25, 0.0 }
  0x34   :  { %v55_v28 = vsel %vm39_vm2, %v169_v26, 0.0  ;;  %vm82_vm8 = vcmp.lt.s32.totalorder %v80_v38, %v81_v39 }
  0x35   :  { %v56_v29 = vadd.f32 %v55_v28, %v54_v27  ;;  %v83_v41 = vsel %vm82_vm8, %v80_v38, %v81_v39 }
  0x36   :  { %vm84_vm9 = vcmp.eq.s32.totalorder %v83_v41, %v36_v40 }
  0x37   :  { %v57_v30 = vrot.slane %v56_v29, 4  ;;  %v155_v45 = vsel %vm84_vm9, 1.0, %v211_v0 }
  0x39   :  { %v58_v32 = vadd.f32 %v57_v30, %v56_v29 }
  0x3b   :  { %v59_v33 = vrot.slane %v58_v32, 2 }
  0x3d   :  { %v60_v35 = vadd.f32 %v59_v33, %v58_v32 }
  0x3f   :  { %v61_v36 = vrot.slane %v60_v35, 1 }
  0x41   :  { %v62_v37 = vadd.f32 %v61_v36, %v60_v35 }
  0x43   :  { %170 = vrcp.f32 %v62_v37 }
  0x4d   :  { %v171_v42 = vpop.eup %170 }
  0x4e   :  { %v88_v43 = vmul.f32 15.0, %v171_v42  ;;  %v87_v48 = vsub.f32 %v171_v42, %v155_v45 }
  0x50   :  { %v89_v44 = vceil.f32 %v88_v43  ;;  %v101_v52 = vrot.slane %v87_v48, %v100_v49 }
  0x52   :  { %v157_v46 = vtrunc.f32 %v89_v44 }
  0x54   :  { %v158_v47 = vcvt.f32.s32 %v157_v46 }
  0x56   :  { %v156_v50 = vadd.s32 4294967295, %v158_v47 }
  0x58   :  { %vm92_vm10 = vcmp.gt.s32.totalorder %v156_v50, 0 }
  0x59   :  { %v93_v51 = vsel %vm92_vm10, %v156_v50, 0 }
  0x5a   :  { %vm94_vm11 = vcmp.lt.s32.totalorder %v93_v51, 14 }
  0x5b   :  { %v95_v53 = vsel %vm94_vm11, %v93_v51, 14 }
  0x5c   :  { %vm96_vm12 = vcmp.eq.s32.totalorder %v95_v53, %v65_v10  ;;  %vm97_vm13 = vcmp.eq.s32.totalorder %v95_v53, %v66_v13 }
  0x5d   :  { %v102_v54 = vsel %vm96_vm12, %v101_v52, 0.0  ;;  %v103_v55 = vsel %vm97_vm13, %v101_v52, 0.0 }
  0x5e   :  { %v106_v56 = vsel %vm37_vm1, %v102_v54, 0.0  ;;  %v110_v57 = vsel %vm109_vm14, %v103_v55, 0.0 }
  0x5f   :  { %107 = vadd.xlane.f32.xlu0 %v106_v56 }
  0x63   :  { %111 = vadd.xlane.f32.xlu0 %v110_v57 }
  0xec   :  { %v108_v59 = vpop.xlane.xlu0 %107 }
  0xed   :  { %v113_v60 = vadd.f32 %v108_v59, %v104_v58 }
  0xef   :  { %116 = vst.msk [vmem:[#allocation2] sm:$0xff] %vm30_vm0, %v113_v60 }
  0xf0   :  { %v112_v62 = vpop.xlane.xlu0 %111 }
  0xf1   :  { %v114_v63 = vadd.f32 %v112_v62, %v105_v61 }
  0xf3   :  { %118 = vst.msk [vmem:[#allocation2 + $0x8] sm:$0x7f] %vm32_vm15, %v114_v63 }
  0xf6   :  { %v122_v1 = vld [vmem:[#allocation2] sm:$0xff] }
  0xf7   :  { %v124_v2 = vand.u32 2147483647, %v122_v1 }
  0xf9   :  { %v126_v5 = vsel %vm30_vm0, %v124_v2, 0.0 }
  0xfa   :  { %v123_v3 = vld [vmem:[#allocation2 + $0x8] sm:$0x7f] }
  0xfb   :  { %v125_v4 = vand.u32 2147483647, %v123_v3 }
  0xfd   :  { %v127_v6 = vsel %vm32_vm15, %v125_v4, 0.0 }
  0xfe   :  { %v128_v7 = vadd.f32 %v127_v6, %v126_v5 }
 0x100   :  { %129 = vadd.xlane.f32.xlu1 %v128_v7 }
 0x18d   :  { %v130_v8 = vpop.xlane.xlu1 %129 }
 0x18e   :  { %v131_v0 = vrot.slane %v130_v8, 4 }
 0x190   :  { %v132_v9 = vadd.f32 %v131_v0, %v130_v8 }
 0x192   :  { %v133_v10 = vrot.slane %v132_v9, 2 }
 0x194   :  { %v134_v11 = vadd.f32 %v133_v10, %v132_v9 }
 0x196   :  { %v135_v12 = vrot.slane %v134_v11, 1 }
 0x198   :  { %v136_v13 = vadd.f32 %v135_v12, %v134_v11 }
 0x19a   :  { %159 = vpush %v136_v13 }
 0x1cb   :  { %s160_s1 = spop %159 }
 0x1cc   :  { %s138_s24 = smul.f32 0.015625, %s160_s1 }
 0x1ce   :  { %140 = sst [smem:[#allocation6]] %s138_s24 }
 0x1cf   :  { %203 = shalt.err (!%p200_p10)
}
 0x1d0   :  { %s212_s4 = smov [#allocation6]  }
 0x1d1   :  { %148 = dma.smem_to_hbm %s212_s4, 16, %s270_s2, [#allocation5]  }
 0x1d2   :  { %206 = dma.done.wait [#allocation5], 16  }
 0x1d3   :  { %207 = vsyncadd [#allocation5], 4294967280 }
 0x1d4   :  { %152 = sfence }
 0x1d5   :  { %153 = vsyncpa [#allocation4], 1 }
 0x1d6   :  { %154 = vsyncpa [#allocation5], 1 }

</bundles_post_ra>
